<compile_context>
chip_gen: v5e
topology: v5e:2x2
jax: 0.10.0
libtpu: 0.0.40
codegen_flags: <defaults>
</compile_context>

<pallas_src>
import jax
import jax.numpy as jnp
from jax.experimental import pallas as pl
from jax.experimental.pallas import tpu as pltpu


def _log_softmax(logits):
    m = jnp.max(logits, axis=-1, keepdims=True)
    z = logits - m
    lse = jnp.log(jnp.sum(jnp.exp(z), axis=-1, keepdims=True))
    return z - lse


def _rnn_cell_kernel(x_ref, h_ref, wx_ref, wh_ref, b_ref, out_ref, hid_ref):
    """One RNN step: fused [H+O]-wide GEMM, K split over (x, hidden)."""
    H = hid_ref.shape[-1]
    acc = (
        jnp.dot(x_ref[...], wx_ref[...], preferred_element_type=jnp.float32)
        + jnp.dot(h_ref[...], wh_ref[...], preferred_element_type=jnp.float32)
        + b_ref[...]
    )
    hid_ref[...] = acc[:, :H].astype(hid_ref.dtype)
    out_ref[...] = _log_softmax(acc[:, H:]).astype(out_ref.dtype)


def _rnn_seq_kernel(x_ref, h0_ref, wx_ref, wh_ref, b_ref, out_ref, hT_ref, h_scr):
    """T recurrent steps in one kernel; hidden state carried in VMEM scratch."""
    t = pl.program_id(0)
    H = h_scr.shape[-1]

    @pl.when(t == 0)
    def _():
        h_scr[...] = h0_ref[...].astype(h_scr.dtype)

    acc = (
        jnp.dot(x_ref[0], wx_ref[...], preferred_element_type=jnp.float32)
        + jnp.dot(h_scr[...], wh_ref[...], preferred_element_type=jnp.float32)
        + b_ref[...]
    )
    h_new = acc[:, :H]
    out_ref[0] = _log_softmax(acc[:, H:]).astype(out_ref.dtype)
    h_scr[...] = h_new

    @pl.when(t == pl.num_programs(0) - 1)
    def _():
        hT_ref[...] = h_new.astype(hT_ref.dtype)


def prepare_params(w_i2h, b_i2h, w_i2o, b_i2o, input_size):
    """Fuse the two Linear heads into one [C, H+O] weight, split along K.

    w_i2h: [C, H], w_i2o: [C, O]  (already [in, out], i.e. torch weight.T)
    Returns (w_x [I, H+O], w_h [H, H+O], b [1, H+O]).
    """
    w_cat = jnp.concatenate([w_i2h, w_i2o], axis=1)
    b_cat = jnp.concatenate([b_i2h, b_i2o]).reshape(1, -1)
    return w_cat[:input_size], w_cat[input_size:], b_cat


@jax.jit
def my_rnn_forward(x, hidden, w_x, w_h, b):
    """Single RNN step, matching MyRNN.forward semantics.

    Returns (log_softmax_output [B, O], new_hidden [B, H]).
    """
    B, I = x.shape
    H = hidden.shape[1]
    HO = w_x.shape[1]
    O = HO - H
    C = I + H
    vmem = pl.BlockSpec(memory_space=pltpu.MemorySpace.VMEM)
    cost = pl.CostEstimate(
        flops=2 * B * C * HO,
        transcendentals=B * (O + 1),
        bytes_accessed=4 * (B * (I + H) + C * HO + HO + B * (O + H)),
    )
    out, new_hidden = pl.pallas_call(
        _rnn_cell_kernel,
        out_shape=(
            jax.ShapeDtypeStruct((B, O), jnp.float32),
            jax.ShapeDtypeStruct((B, H), jnp.float32),
        ),
        in_specs=[vmem, vmem, vmem, vmem, vmem],
        out_specs=(vmem, vmem),
        input_output_aliases={1: 1},  # hidden in -> new_hidden out
        cost_estimate=cost,
    )(x, hidden, w_x, w_h, b)
    return out, new_hidden


@jax.jit
def my_rnn_sequence(xs, hidden0, w_x, w_h, b):
    """Run T recurrent steps in one pallas_call (weights stay VMEM-resident).

    xs: [T, B, I]; returns (log_softmax outputs [T, B, O], final hidden [B, H]).
    """
    T, B, I = xs.shape
    H = hidden0.shape[1]
    HO = w_x.shape[1]
    O = HO - H
    C = I + H
    cost = pl.CostEstimate(
        flops=2 * T * B * C * HO,
        transcendentals=T * B * (O + 1),
        bytes_accessed=4 * (T * B * (I + O) + 2 * B * H + C * HO + HO),
    )
    grid_spec = pltpu.PrefetchScalarGridSpec(
        num_scalar_prefetch=0,
        grid=(T,),
        in_specs=[
            pl.BlockSpec((1, B, I), lambda t: (t, 0, 0)),  # x_t streamed per step
            pl.BlockSpec((B, H), lambda t: (0, 0)),        # h0: copied in once
            pl.BlockSpec((I, HO), lambda t: (0, 0)),       # w_x: VMEM-resident
            pl.BlockSpec((H, HO), lambda t: (0, 0)),       # w_h: VMEM-resident
            pl.BlockSpec((1, HO), lambda t: (0, 0)),       # bias: VMEM-resident
        ],
        out_specs=(
            pl.BlockSpec((1, B, O), lambda t: (t, 0, 0)),  # per-step log-probs
            pl.BlockSpec((B, H), lambda t: (0, 0)),        # final hidden (resident)
        ),
        scratch_shapes=[pltpu.VMEM((B, H), jnp.float32)],
    )
    outs, h_final = pl.pallas_call(
        _rnn_seq_kernel,
        out_shape=(
            jax.ShapeDtypeStruct((T, B, O), jnp.float32),
            jax.ShapeDtypeStruct((B, H), jnp.float32),
        ),
        grid_spec=grid_spec,
        compiler_params=pltpu.CompilerParams(
            dimension_semantics=("arbitrary",),  # time is a true recurrence
        ),
        input_output_aliases={1: 1},  # hidden0 buffer -> final hidden
        cost_estimate=cost,
    )(xs, hidden0, w_x, w_h, b)
    return outs, h_final


def _reference_step(x, h, w_i2h, b_i2h, w_i2o, b_i2o):
    combined = jnp.concatenate([x, h], axis=1)
    new_h = combined @ w_i2h + b_i2h
    out = jax.nn.log_softmax(combined @ w_i2o + b_i2o, axis=1)
    return out, new_h


if __name__ == "__main__":
    batch, input_size, hidden_size, output_size, seq_len = 2, 16, 32, 8, 8
    C = input_size + hidden_size

    key = jax.random.PRNGKey(0)
    k_x, k_xs, k_wh, k_bh, k_wo, k_bo = jax.random.split(key, 6)

    # PyTorch-Linear-style init: uniform(-1/sqrt(in), 1/sqrt(in)), weights [in, out].
    bound = 1.0 / jnp.sqrt(jnp.float32(C))
    w_i2h = jax.random.uniform(k_wh, (C, hidden_size), jnp.float32, -bound, bound)
    b_i2h = jax.random.uniform(k_bh, (hidden_size,), jnp.float32, -bound, bound)
    w_i2o = jax.random.uniform(k_wo, (C, output_size), jnp.float32, -bound, bound)
    b_i2o = jax.random.uniform(k_bo, (output_size,), jnp.float32, -bound, bound)

    w_x, w_h, b = prepare_params(w_i2h, b_i2h, w_i2o, b_i2o, input_size)

    # --- single step (exactly MyRNN.forward) ---
    x = jax.random.normal(k_x, (batch, input_size), jnp.float32)
    hidden = jnp.zeros((batch, hidden_size), jnp.float32)  # initHidden()

    out, new_hidden = my_rnn_forward(x, hidden, w_x, w_h, b)
    out, new_hidden = jax.block_until_ready((out, new_hidden))

    ref_out, ref_hidden = _reference_step(x, hidden, w_i2h, b_i2h, w_i2o, b_i2o)
    assert jnp.allclose(out, ref_out, atol=2e-5, rtol=2e-5), "step output mismatch"
    assert jnp.allclose(new_hidden, ref_hidden, atol=2e-5, rtol=2e-5), "step hidden mismatch"

    # --- full sequence: T recurrent applications of the same cell, one kernel ---
    xs = jax.random.normal(k_xs, (seq_len, batch, input_size), jnp.float32)
    h0 = jnp.zeros((batch, hidden_size), jnp.float32)

    seq_out, seq_hT = my_rnn_sequence(xs, h0, w_x, w_h, b)
    seq_out, seq_hT = jax.block_until_ready((seq_out, seq_hT))

    ref_h = h0
    for t in range(seq_len):
        ref_o, ref_h = _reference_step(xs[t], ref_h, w_i2h, b_i2h, w_i2o, b_i2o)
        assert jnp.allclose(seq_out[t], ref_o, atol=1e-4, rtol=1e-4), f"seq output mismatch @ t={t}"
    assert jnp.allclose(seq_hT, ref_h, atol=1e-4, rtol=1e-4), "seq final hidden mismatch"

    print("KERNEL_OK")
</pallas_src>

<mosaic_0001>
module attributes {stable_mosaic.version = 11 : i64} {
  func.func @_rnn_cell_kernel(%arg0: memref<2x16xf32, #tpu.memory_space<vmem>>, %arg1: memref<2x32xf32, #tpu.memory_space<vmem>>, %arg2: memref<16x40xf32, #tpu.memory_space<vmem>>, %arg3: memref<32x40xf32, #tpu.memory_space<vmem>>, %arg4: memref<1x40xf32, #tpu.memory_space<vmem>>, %arg5: memref<2x8xf32, #tpu.memory_space<vmem>>, %arg6: memref<2x32xf32, #tpu.memory_space<vmem>>) attributes {dimension_semantics = [], scalar_prefetch = 0 : i64, scratch_operands = 0 : i64, tpu.core_type = #tpu.core_type<tc>} {
    %c0 = arith.constant 0 : index
    %c0_0 = arith.constant 0 : index
    %0 = vector.load %arg0[%c0, %c0_0] : memref<2x16xf32, #tpu.memory_space<vmem>>, vector<2x16xf32>
    %c0_1 = arith.constant 0 : index
    %c0_2 = arith.constant 0 : index
    %1 = vector.load %arg2[%c0_1, %c0_2] : memref<16x40xf32, #tpu.memory_space<vmem>>, vector<16x40xf32>
    %cst = arith.constant dense<0.000000e+00> : vector<2x40xf32>
    %2 = tpu.matmul %0, %1, %cst {dimension_numbers = #tpu.dot_dimension_numbers<[1], [0], [0], [1], [0, 0, 1, 1], [], []>} : vector<2x16xf32>, vector<16x40xf32>, vector<2x40xf32> -> vector<2x40xf32>
    %c0_3 = arith.constant 0 : index
    %c0_4 = arith.constant 0 : index
    %3 = vector.load %arg1[%c0_3, %c0_4] : memref<2x32xf32, #tpu.memory_space<vmem>>, vector<2x32xf32>
    %c0_5 = arith.constant 0 : index
    %c0_6 = arith.constant 0 : index
    %4 = vector.load %arg3[%c0_5, %c0_6] : memref<32x40xf32, #tpu.memory_space<vmem>>, vector<32x40xf32>
    %cst_7 = arith.constant dense<0.000000e+00> : vector<2x40xf32>
    %5 = tpu.matmul %3, %4, %cst_7 {dimension_numbers = #tpu.dot_dimension_numbers<[1], [0], [0], [1], [0, 0, 1, 1], [], []>} : vector<2x32xf32>, vector<32x40xf32>, vector<2x40xf32> -> vector<2x40xf32>
    %6 = arith.addf %2, %5 : vector<2x40xf32>
    %c0_8 = arith.constant 0 : index
    %c0_9 = arith.constant 0 : index
    %7 = vector.load %arg4[%c0_8, %c0_9] : memref<1x40xf32, #tpu.memory_space<vmem>>, vector<1x40xf32>
    %8 = vector.broadcast %7 : vector<1x40xf32> to vector<2x40xf32>
    %9 = arith.addf %6, %8 : vector<2x40xf32>
    %10 = vector.extract_strided_slice %9 {offsets = [0, 0], sizes = [2, 32], strides = [1, 1]} : vector<2x40xf32> to vector<2x32xf32>
    %c0_10 = arith.constant 0 : index
    %c0_11 = arith.constant 0 : index
    %11 = vector.load %arg6[%c0_10, %c0_11] : memref<2x32xf32, #tpu.memory_space<vmem>>, vector<2x32xf32>
    tpu.vector_store %arg6[%c0_10, %c0_11], %10 {strides = array<i32>} : memref<2x32xf32, #tpu.memory_space<vmem>>, vector<2x32xf32>,
    %12 = vector.extract_strided_slice %9 {offsets = [0, 32], sizes = [2, 8], strides = [1, 1]} : vector<2x40xf32> to vector<2x8xf32>
    %cst_12 = arith.constant dense<0xFF800000> : vector<2xf32>
    %13 = vector.multi_reduction <maximumf>, %12, %cst_12 [1] : vector<2x8xf32> to vector<2xf32>
    %14 = vector.shape_cast %13 : vector<2xf32> to vector<2x1xf32>
    %15 = vector.broadcast %14 : vector<2x1xf32> to vector<2x8xf32>
    %16 = arith.subf %12, %15 : vector<2x8xf32>
    %17 = math.exp %16 : vector<2x8xf32>
    %cst_13 = arith.constant dense<0.000000e+00> : vector<2xf32>
    %18 = vector.multi_reduction <add>, %17, %cst_13 [1] : vector<2x8xf32> to vector<2xf32>
    %19 = vector.shape_cast %18 : vector<2xf32> to vector<2x1xf32>
    %20 = math.log %19 : vector<2x1xf32>
    %21 = vector.broadcast %20 : vector<2x1xf32> to vector<2x8xf32>
    %22 = arith.subf %16, %21 : vector<2x8xf32>
    %c0_14 = arith.constant 0 : index
    %c0_15 = arith.constant 0 : index
    %23 = vector.load %arg5[%c0_14, %c0_15] : memref<2x8xf32, #tpu.memory_space<vmem>>, vector<2x8xf32>
    tpu.vector_store %arg5[%c0_14, %c0_15], %22 {strides = array<i32>} : memref<2x8xf32, #tpu.memory_space<vmem>>, vector<2x8xf32>,
    return
  }
}

</mosaic_0001>

<bundles_post_ra>
// kernel: my_rnn_forward.1
= control target key start
LH: loop header
LB: loop body
LE: loop exit
PB: predicated region body
PF: predicated region fallthrough
CT: control target
= control target key end

     0   :  { %12 = vsyncpa [#allocation3], 0  ;;  %s398_s0 = inlined_call_operand.vmem [shape: f32[2,16], index: 0, kind: input, shape index: {}]   ;;  %s399_s1 = inlined_call_operand.hbm [shape: f32[2,32], index: 1, kind: input, shape index: {}, may-alias: {1,6}]   ;;  %s400_s2 = inlined_call_operand.hbm [shape: f32[16,40], index: 2, kind: input, shape index: {}]   ;;  %s401_s3 = inlined_call_operand.hbm [shape: f32[32,40], index: 3, kind: input, shape index: {}]   ;;  %s402_s4 = inlined_call_operand.vmem [shape: f32[1,40], index: 4, kind: input, shape index: {}]   ;;  %s403_s5 = inlined_call_operand.hbm [shape: f32[2,8], index: 5, kind: output, shape index: {0}]   ;;  %s404_s6 = inlined_call_operand.hbm [shape: f32[2,32], index: 6, kind: output, shape index: {1}, may-alias: {1,6}]  }
   0x1   :  { %13 = vsyncpa [#allocation6], 0 }
   0x2   :  { %14 = vsyncpa [#allocation4], 0  ;;  %s33_s23 = sshll.u32 %s400_s2, 4  ;;  %s34_s23 = int_to_ptr.hbm [resolvable:$true] %s33_s23 }
   0x3   :  { %15 = vsyncpa [#allocation10], 0  ;;  %s332_s24 = smov [#allocation5]   ;;  %s23_s28 = sshll.u32 %s399_s1, 4  ;;  %s24_s28 = int_to_ptr.hbm [resolvable:$true] %s23_s28 }
   0x4   :  { %s35_s25 = sshll.u32 %s332_s24, 4  ;;  %s333_s29 = smov 128   ;;  %s36_s25 = int_to_ptr.vmem [resolvable:$true] %s35_s25 }
   0x5   :  { %s334_s30 = smov 8   ;;  %s335_s7 = smov [#allocation2]  }
   0x6   :  { %41 = dma.hbm_to_vmem [thread:$0]  %s34_s23, 256, %s36_s25, [#allocation6], %s333_s29, %s333_s29, %s334_s30  }
   0x7   :  { %s25_s8 = sshll.u32 %s335_s7, 4  ;;  %s46_s11 = sshll.u32 %s401_s3, 4  ;;  %s26_s8 = int_to_ptr.vmem [resolvable:$true] %s25_s8  ;;  %s47_s11 = int_to_ptr.hbm [resolvable:$true] %s46_s11 }
   0x8   :  { %28 = dma.hbm_to_vmem [thread:$0]  %s24_s28, 32, %s26_s8, [#allocation3]  }
   0x9   :  { %s336_s2 = smov [#allocation7]  }
   0xa   :  { %s48_s12 = sshll.u32 %s336_s2, 4  ;;  %s49_s12 = int_to_ptr.vmem [resolvable:$true] %s48_s12 }
   0xb   :  { %54 = dma.hbm_to_vmem [thread:$0]  %s47_s11, 512, %s49_s12, [#allocation6], %s333_s29, %s333_s29, %s334_s30  }
   0xc   :  { %324 = dma.done.wait [#allocation3], 32  }
   0xd   :  { %325 = vsyncadd [#allocation3], 4294967264 }
   0xe   :  { %326 = dma.done.wait [#allocation6], 768  }
   0xf   :  { %327 = vsyncadd [#allocation6], 4294966528  ;;  %v76_v0 = vld [vmem:[#allocation7 + $0x18] sm:$0xff]  ;;  %v75_v1 = vld [vmem:[#allocation7 + $0x10] sm:$0xff]  ;;  %vm101_vm0 = vcmask 130048   ;;  %vm77_vm1 = vcmask 261120  }
  0x10   :  { %93 = vmatpush.msra.mxu0 %v76_v0  ;;  %v71_v2 = vld [vmem:[#allocation5 + $0x8] sm:$0xff]  ;;  %v70_v3 = vld [vmem:[#allocation5] sm:$0xff]  ;;  %v74_v4 = vld [vmem:[#allocation7 + $0x8] sm:$0xff]  ;;  %vm132_vm2 = vcmask 320768   ;;  %vm130_vm3 = vcmask 254976   ;;  %vm143_vm4 = vcmask 58368  }
  0x11   :  { %119 = vmatpush.msra.mxu1 %v71_v2  ;;  %v69_v5 = vld [vmem:[%s398_s0] sm:$0x3]  ;;  %v73_v6 = vld [vmem:[#allocation7] sm:$0xff]  ;;  %s337_s0 = smov 96   ;;  %s173_s18 = sshll.u32 %s404_s6, 4  ;;  %s174_s18 = int_to_ptr.hbm [resolvable:$true] %s173_s18 }
  0x12   :  { %94 = vmatpush.msra.mxu0 %v75_v1  ;;  %v72_v7 = vld [vmem:[#allocation2] sm:$0x3]  ;;  %s339_s19 = smov [#allocation8]   ;;  %s162_s23 = sshll.u32 %s403_s5, 4  ;;  %s163_s23 = int_to_ptr.hbm [resolvable:$true] %s162_s23 }
  0x13   :  { %120 = vmatpush.msra.mxu1 %v70_v3  ;;  %v199_v9 = vld [vmem:[%s402_s4] ss:$0 sm:$0xff]  ;;  %s338_s4 = smov [#allocation9]   ;;  %s160_s20 = sshll.u32 %s339_s19, 4  ;;  %s161_s20 = int_to_ptr.vmem [resolvable:$true] %s160_s20 }
  0x14   :  { %95 = vmatpush.msra.mxu0 %v74_v4  ;;  %190 = vmatmul.msk.f32.vlgmr.msra.gmra.mxu1 %vm101_vm0, %v69_v5  ;;  %s171_s15 = sshll.u32 %s338_s4, 4  ;;  %s172_s15 = int_to_ptr.vmem [resolvable:$true] %s171_s15 }
  0x16   :  { %96 = vmatpush.msra.mxu0 %v73_v6 }
  0x17   :  { %189 = vmatmul.msk.f32.vlgmr.msra.gmra.mxu0 %vm77_vm1, %v72_v7 }
  0x91   :  { %v122_v8 = vpop.f32.mrf.mxu1 }
  0x94   :  { %v98_v10 = vpop.f32.mrf.mxu0 }
  0x95   :  { %v123_v11 = vadd.f32 %v122_v8, %v98_v10 }
  0x97   :  { %v129_v12 = vadd.f32 %v199_v9, %v123_v11 }
  0x99   :  { %v133_v13 = vsel %vm132_vm2, %v129_v12, -inf  ;;  %131 = vst.msk [vmem:[#allocation9] sm:$0x3] %vm130_vm3, %v129_v12 }
  0x9a   :  { %134 = vmax.xlane.f32.xlu0 %v133_v13  ;;  %176 = dma.vmem_to_hbm [thread:$0]  %s172_s15, 32, %s174_s18, [#allocation10]  }
 0x10d   :  { %v135_v14 = vpop.xlane.xlu0 %134 }
 0x10e   :  { %v136_v15 = vsub.f32 %v129_v12, %v135_v14 }
 0x110   :  { %v137_v16 = vmul.f32 1.442695, %v136_v15 }
 0x112   :  { %200 = vpow2.f32 %v137_v16 }
 0x118   :  { %v201_v17 = vpop.eup %200 }
 0x119   :  { %140 = vrot.lane.b32.xlu0 %v201_v17, %s337_s0 }
 0x18b   :  { %v141_v18 = vpop.permute.xlu0 %140 }
 0x18c   :  { %v144_v19 = vsel %vm143_vm4, %v141_v18, 0.0 }
 0x18d   :  { %145 = vadd.xlane.f32.xlu1 %v144_v19 }
 0x200   :  { %v146_v20 = vpop.xlane.xlu1 %145 }
 0x201   :  { %202 = vlog2.f32 %v146_v20 }
 0x207   :  { %v203_v21 = vpop.eup %202 }
 0x208   :  { %v148_v22 = vmul.f32 0.6931472, %v203_v21 }
 0x20a   :  { %v149_v23 = vsub.f32 %v136_v15, %v148_v22 }
 0x20c   :  { %151 = vrot.lane.b32.xlu1 %v149_v23, %s337_s0 }
 0x27e   :  { %v152_v24 = vpop.permute.xlu1 %151 }
 0x27f   :  { %154 = vst.msk [vmem:[#allocation8] sm:$0x3] %vm143_vm4, %v152_v24 }
 0x280   :  { %165 = dma.vmem_to_hbm [thread:$0]  %s161_s20, 32, %s163_s23, [#allocation4]  }
 0x281   :  { %328 = dma.done.wait [#allocation4], 32  }
 0x282   :  { %329 = vsyncadd [#allocation4], 4294967264 }
 0x283   :  { %330 = dma.done.wait [#allocation10], 32  }
 0x284   :  { %331 = vsyncadd [#allocation10], 4294967264 }
 0x285   :  { %185 = vsyncpa [#allocation3], 1 }
 0x286   :  { %186 = vsyncpa [#allocation6], 1 }
 0x287   :  { %187 = vsyncpa [#allocation4], 1 }
 0x288   :  { %188 = vsyncpa [#allocation10], 1 }

</bundles_post_ra>
